<compile_context>
chip_gen: v7x
topology: tpu7x:2x2x1
jax: 0.10.0
libtpu: 0.0.40
codegen_flags: <defaults>
</compile_context>

<pallas_src>
import functools

import jax
import jax.numpy as jnp
from jax.experimental import pallas as pl
from jax.experimental.pallas import tpu as pltpu


def _round_up(x, m):
    return ((x + m - 1) // m) * m


def _disc_kernel(*refs, use_dropout, keep_threshold, inv_keep, negative_slope):
    if use_dropout:
        (x_ref, bits1_ref, bits2_ref,
         w1_ref, b1_ref, w2_ref, b2_ref, y_ref) = refs
    else:
        x_ref, w1_ref, b1_ref, w2_ref, b2_ref, y_ref = refs

    x = x_ref[...]
    if use_dropout:
        # Integer-domain Bernoulli(keep): keep element iff bits < keep * 2**32.
        thr = jnp.uint32(keep_threshold)
        x = jnp.where(bits1_ref[...] < thr, x, jnp.zeros_like(x))

    # linear1 on the MXU, f32 accumulation.
    z = jnp.dot(x, w1_ref[...], preferred_element_type=jnp.float32)
    if use_dropout:
        z = z * inv_keep                       # folded inverted-dropout scale
    h = z + b1_ref[...].astype(jnp.float32)    # (1, H) broadcast
    h = jnp.where(h >= 0.0, h, negative_slope * h)   # LeakyReLU (default slope 0.01)

    if use_dropout:
        thr = jnp.uint32(keep_threshold)
        h = jnp.where(bits2_ref[...] < thr, h, 0.0)

    # linear2 (N=1): VPU multiply + lane (XLU) reduction instead of a 1-column matmul.
    y = jnp.sum(h * w2_ref[...].astype(jnp.float32), axis=-1, keepdims=True)
    if use_dropout:
        y = y * inv_keep                       # folded scale for the second dropout
    y = y + b2_ref[...].astype(jnp.float32)
    y_ref[...] = y.astype(y_ref.dtype)
    # TODO(synk): for very large B, accumulate y as a lane-dense (1, TB) row instead of a
    # (TB, 1) column to avoid masked single-lane stores on the writeback path.


def discriminator_forward(x, w1, b1, w2, b2, *, key=None, p_dropout=0.5,
                          negative_slope=0.01, training=True, block_b=128,
                          matmul_dtype=jnp.float32):
    """Pallas TPU forward pass of the Discriminator.

    x : (B, input_dim)
    w1: (input_dim, hidden_dim), b1: (hidden_dim,)
    w2: (hidden_dim, 1),         b2: (1,)
    returns (B, 1) float32
    """
    x = jnp.asarray(x)
    B, D = x.shape
    H = w1.shape[1]
    assert w1.shape == (D, H)

    p_dropout = float(p_dropout)
    use_dropout = bool(training) and p_dropout > 0.0
    if use_dropout:
        assert p_dropout < 1.0, "p_dropout must be < 1 in training mode"
    keep = 1.0 - p_dropout
    keep_threshold = min(int(round(keep * (1 << 32))), (1 << 32) - 1)
    inv_keep = (1.0 / keep) if use_dropout else 1.0

    # Batch tile: multiple of 8 sublanes, capped at block_b (128 keeps the MXU M dim
    # full while the double-buffered (TB, D) tiles stay small even on v7x's 64 MiB VMEM).
    TB = min(_round_up(int(block_b), 8), _round_up(B, 8))
    B_pad = _round_up(B, TB)
    n_tiles = B_pad // TB

    x_p = x.astype(matmul_dtype)
    if B_pad != B:
        x_p = jnp.pad(x_p, ((0, B_pad - B), (0, 0)))

    w1_p = w1.astype(matmul_dtype)
    b1_2d = b1.reshape(1, H).astype(jnp.float32)
    w2_row = w2.reshape(1, H).astype(jnp.float32)   # (H, 1) -> lane-major (1, H) row
    b2_2d = b2.reshape(1, 1).astype(jnp.float32)

    kernel = functools.partial(
        _disc_kernel,
        use_dropout=use_dropout,
        keep_threshold=keep_threshold,
        inv_keep=inv_keep,
        negative_slope=float(negative_slope),
    )

    weight_specs = [
        pl.BlockSpec((D, H), lambda i: (0, 0)),   # w1 resident across all batch tiles
        pl.BlockSpec((1, H), lambda i: (0, 0)),   # b1
        pl.BlockSpec((1, H), lambda i: (0, 0)),   # w2 row
        pl.BlockSpec((1, 1), lambda i: (0, 0)),   # b2
    ]

    if use_dropout:
        if key is None:
            key = jax.random.PRNGKey(0)
        k1, k2 = jax.random.split(key)
        # Host-side uint32 bits (deterministic given `key`); thresholded in-kernel.
        bits1 = jax.random.bits(k1, (B_pad, D), dtype=jnp.uint32)
        bits2 = jax.random.bits(k2, (B_pad, H), dtype=jnp.uint32)
        inputs = (x_p, bits1, bits2, w1_p, b1_2d, w2_row, b2_2d)
        in_specs = [
            pl.BlockSpec((TB, D), lambda i: (i, 0)),
            pl.BlockSpec((TB, D), lambda i: (i, 0)),
            pl.BlockSpec((TB, H), lambda i: (i, 0)),
        ] + weight_specs
    else:
        inputs = (x_p, w1_p, b1_2d, w2_row, b2_2d)
        in_specs = [pl.BlockSpec((TB, D), lambda i: (i, 0))] + weight_specs

    out = pl.pallas_call(
        kernel,
        out_shape=jax.ShapeDtypeStruct((B_pad, 1), jnp.float32),
        grid=(n_tiles,),
        in_specs=in_specs,
        out_specs=pl.BlockSpec((TB, 1), lambda i: (i, 0)),
        compiler_params=pltpu.CompilerParams(
            dimension_semantics=("parallel",),   # batch tiles shard across TCs on v7x
        ),
    )(*inputs)

    return out[:B] if B_pad != B else out


def _reference_eval(x, w1, b1, w2, b2, negative_slope=0.01):
    """Pure-JAX eval-mode reference (dropout = identity)."""
    h = x @ w1 + b1
    h = jnp.where(h >= 0.0, h, negative_slope * h)
    return h @ w2 + b2


if __name__ == "__main__":
    # Small, deterministic problem: batch=8, input_dim=32, hidden_dim=32.
    B, INPUT_DIM, HIDDEN_DIM = 8, 32, 32
    P_DROPOUT = 0.5

    key = jax.random.PRNGKey(0)
    kx, k1, kb1, k2, kb2, kdrop = jax.random.split(key, 6)

    x = jax.random.normal(kx, (B, INPUT_DIM), dtype=jnp.float32)

    # nn.Linear-style init: U(-1/sqrt(fan_in), 1/sqrt(fan_in)); weights stored (in, out).
    lim1 = 1.0 / (INPUT_DIM ** 0.5)
    w1 = jax.random.uniform(k1, (INPUT_DIM, HIDDEN_DIM), jnp.float32, -lim1, lim1)
    b1 = jax.random.uniform(kb1, (HIDDEN_DIM,), jnp.float32, -lim1, lim1)
    lim2 = 1.0 / (HIDDEN_DIM ** 0.5)
    w2 = jax.random.uniform(k2, (HIDDEN_DIM, 1), jnp.float32, -lim2, lim2)
    b2 = jax.random.uniform(kb2, (1,), jnp.float32, -lim2, lim2)

    # Training mode (dropout active, deterministic given kdrop).
    y_train = discriminator_forward(x, w1, b1, w2, b2, key=kdrop,
                                    p_dropout=P_DROPOUT, training=True)
    y_train = jax.block_until_ready(y_train)
    assert y_train.shape == (B, 1) and y_train.dtype == jnp.float32
    assert bool(jnp.all(jnp.isfinite(y_train))), "non-finite training-mode output"

    # Eval mode (dropout = identity) checked against a pure-JAX reference.
    y_eval = discriminator_forward(x, w1, b1, w2, b2,
                                   p_dropout=P_DROPOUT, training=False)
    y_eval = jax.block_until_ready(y_eval)
    y_ref = _reference_eval(x, w1, b1, w2, b2)
    assert jnp.allclose(y_eval, y_ref, atol=1e-5, rtol=1e-5), "eval-mode mismatch vs reference"

    # Exercise the batch-tiled grid (grid > 1) plus batch padding on a second small case.
    B2 = 20
    x2 = jax.random.normal(jax.random.PRNGKey(1), (B2, INPUT_DIM), dtype=jnp.float32)
    y2 = discriminator_forward(x2, w1, b1, w2, b2, p_dropout=P_DROPOUT,
                               training=False, block_b=8)
    y2 = jax.block_until_ready(y2)
    assert y2.shape == (B2, 1)
    assert jnp.allclose(y2, _reference_eval(x2, w1, b1, w2, b2), atol=1e-5, rtol=1e-5), \
        "tiled eval-mode mismatch vs reference"

    print("KERNEL_OK")
</pallas_src>

<mosaic_0001>
module attributes {stable_mosaic.version = 11 : i64} {
  func.func @_disc_kernel(%arg0: i32, %arg1: memref<8x32xf32, #tpu.memory_space<vmem>>, %arg2: memref<8x32xi32, #tpu.memory_space<vmem>>, %arg3: memref<8x32xi32, #tpu.memory_space<vmem>>, %arg4: memref<32x32xf32, #tpu.memory_space<vmem>>, %arg5: memref<1x32xf32, #tpu.memory_space<vmem>>, %arg6: memref<1x32xf32, #tpu.memory_space<vmem>>, %arg7: memref<1x1xf32, #tpu.memory_space<vmem>>, %arg8: memref<8x1xf32, #tpu.memory_space<vmem>>) attributes {dimension_semantics = [#tpu.dimension_semantics<parallel>], iteration_bounds = array<i64: 1>, scalar_prefetch = 0 : i64, scratch_operands = 0 : i64, tpu.core_type = #tpu.core_type<tc>, window_params = [{transform_indices = @transform_0, window_bounds = array<i64: 8, 32>}, {transform_indices = @transform_1, window_bounds = array<i64: 8, 32>}, {transform_indices = @transform_2, window_bounds = array<i64: 8, 32>}, {pipeline_mode = #tpu.pipeline_mode<synchronous>, transform_indices = @transform_3, window_bounds = array<i64: 32, 32>}, {pipeline_mode = #tpu.pipeline_mode<synchronous>, transform_indices = @transform_4, window_bounds = array<i64: 1, 32>}, {pipeline_mode = #tpu.pipeline_mode<synchronous>, transform_indices = @transform_5, window_bounds = array<i64: 1, 32>}, {pipeline_mode = #tpu.pipeline_mode<synchronous>, transform_indices = @transform_6, window_bounds = array<i64: 1, 1>}, {transform_indices = @transform_7, window_bounds = array<i64: 8, 1>}]} {
    %c0 = arith.constant 0 : index
    %c0_0 = arith.constant 0 : index
    %0 = vector.load %arg1[%c0, %c0_0] : memref<8x32xf32, #tpu.memory_space<vmem>>, vector<8x32xf32>
    %c0_1 = arith.constant 0 : index
    %c0_2 = arith.constant 0 : index
    %1 = vector.load %arg2[%c0_1, %c0_2] : memref<8x32xi32, #tpu.memory_space<vmem>>, vector<8x32xi32>
    %c-2147483648_i32 = arith.constant -2147483648 : i32
    %2 = vector.broadcast %c-2147483648_i32 : i32 to vector<8x32xi32>
    %3 = arith.cmpi ult, %1, %2 : vector<8x32xi32>
    %cst = arith.constant 0.000000e+00 : f32
    %4 = vector.broadcast %cst : f32 to vector<8x32xf32>
    %5 = arith.select %3, %0, %4 : vector<8x32xi1>, vector<8x32xf32>
    %c0_3 = arith.constant 0 : index
    %c0_4 = arith.constant 0 : index
    %6 = vector.load %arg4[%c0_3, %c0_4] : memref<32x32xf32, #tpu.memory_space<vmem>>, vector<32x32xf32>
    %cst_5 = arith.constant dense<0.000000e+00> : vector<8x32xf32>
    %7 = tpu.matmul %5, %6, %cst_5 {dimension_numbers = #tpu.dot_dimension_numbers<[1], [0], [0], [1], [0, 0, 1, 1], [], []>} : vector<8x32xf32>, vector<32x32xf32>, vector<8x32xf32> -> vector<8x32xf32>
    %cst_6 = arith.constant 2.000000e+00 : f32
    %8 = vector.broadcast %cst_6 : f32 to vector<8x32xf32>
    %9 = arith.mulf %7, %8 : vector<8x32xf32>
    %c0_7 = arith.constant 0 : index
    %c0_8 = arith.constant 0 : index
    %10 = vector.load %arg5[%c0_7, %c0_8] : memref<1x32xf32, #tpu.memory_space<vmem>>, vector<1x32xf32>
    %11 = vector.broadcast %10 : vector<1x32xf32> to vector<8x32xf32>
    %12 = arith.addf %9, %11 : vector<8x32xf32>
    %cst_9 = arith.constant 0.000000e+00 : f32
    %13 = vector.broadcast %cst_9 : f32 to vector<8x32xf32>
    %14 = arith.cmpf oge, %12, %13 : vector<8x32xf32>
    %cst_10 = arith.constant 0.00999999977 : f32
    %15 = vector.broadcast %cst_10 : f32 to vector<8x32xf32>
    %16 = arith.mulf %15, %12 : vector<8x32xf32>
    %17 = arith.select %14, %12, %16 : vector<8x32xi1>, vector<8x32xf32>
    %c0_11 = arith.constant 0 : index
    %c0_12 = arith.constant 0 : index
    %18 = vector.load %arg3[%c0_11, %c0_12] : memref<8x32xi32, #tpu.memory_space<vmem>>, vector<8x32xi32>
    %c-2147483648_i32_13 = arith.constant -2147483648 : i32
    %19 = vector.broadcast %c-2147483648_i32_13 : i32 to vector<8x32xi32>
    %20 = arith.cmpi ult, %18, %19 : vector<8x32xi32>
    %cst_14 = arith.constant 0.000000e+00 : f32
    %21 = vector.broadcast %cst_14 : f32 to vector<8x32xf32>
    %22 = arith.select %20, %17, %21 : vector<8x32xi1>, vector<8x32xf32>
    %c0_15 = arith.constant 0 : index
    %c0_16 = arith.constant 0 : index
    %23 = vector.load %arg6[%c0_15, %c0_16] : memref<1x32xf32, #tpu.memory_space<vmem>>, vector<1x32xf32>
    %24 = vector.broadcast %23 : vector<1x32xf32> to vector<8x32xf32>
    %25 = arith.mulf %22, %24 : vector<8x32xf32>
    %cst_17 = arith.constant dense<0.000000e+00> : vector<8xf32>
    %26 = vector.multi_reduction <add>, %25, %cst_17 [1] : vector<8x32xf32> to vector<8xf32>
    %27 = vector.shape_cast %26 : vector<8xf32> to vector<8x1xf32>
    %cst_18 = arith.constant 2.000000e+00 : f32
    %28 = vector.broadcast %cst_18 : f32 to vector<8x1xf32>
    %29 = arith.mulf %27, %28 : vector<8x1xf32>
    %c0_19 = arith.constant 0 : index
    %c0_20 = arith.constant 0 : index
    %30 = vector.load %arg7[%c0_19, %c0_20] : memref<1x1xf32, #tpu.memory_space<vmem>>, vector<1x1xf32>
    %31 = vector.broadcast %30 : vector<1x1xf32> to vector<8x1xf32>
    %32 = arith.addf %29, %31 : vector<8x1xf32>
    %c0_21 = arith.constant 0 : index
    %c0_22 = arith.constant 0 : index
    %33 = vector.load %arg8[%c0_21, %c0_22] : memref<8x1xf32, #tpu.memory_space<vmem>>, vector<8x1xf32>
    tpu.vector_store %arg8[%c0_21, %c0_22], %32 {strides = array<i32>} : memref<8x1xf32, #tpu.memory_space<vmem>>, vector<8x1xf32>,
    return
  }
  func.func @transform_0(%arg0: i32) -> (i32, i32) {
    %c0_i32 = arith.constant 0 : i32
    %c0_i32_0 = arith.constant 0 : i32
    return %arg0, %c0_i32 : i32, i32
  }
  func.func @transform_1(%arg0: i32) -> (i32, i32) {
    %c0_i32 = arith.constant 0 : i32
    %c0_i32_0 = arith.constant 0 : i32
    return %arg0, %c0_i32 : i32, i32
  }
  func.func @transform_2(%arg0: i32) -> (i32, i32) {
    %c0_i32 = arith.constant 0 : i32
    %c0_i32_0 = arith.constant 0 : i32
    return %arg0, %c0_i32 : i32, i32
  }
  func.func @transform_3(%arg0: i32) -> (i32, i32) {
    %c0_i32 = arith.constant 0 : i32
    %c0_i32_0 = arith.constant 0 : i32
    %c0_i32_1 = arith.constant 0 : i32
    return %c0_i32, %c0_i32_0 : i32, i32
  }
  func.func @transform_4(%arg0: i32) -> (i32, i32) {
    %c0_i32 = arith.constant 0 : i32
    %c0_i32_0 = arith.constant 0 : i32
    %c0_i32_1 = arith.constant 0 : i32
    return %c0_i32, %c0_i32_0 : i32, i32
  }
  func.func @transform_5(%arg0: i32) -> (i32, i32) {
    %c0_i32 = arith.constant 0 : i32
    %c0_i32_0 = arith.constant 0 : i32
    %c0_i32_1 = arith.constant 0 : i32
    return %c0_i32, %c0_i32_0 : i32, i32
  }
  func.func @transform_6(%arg0: i32) -> (i32, i32) {
    %c0_i32 = arith.constant 0 : i32
    %c0_i32_0 = arith.constant 0 : i32
    %c0_i32_1 = arith.constant 0 : i32
    return %c0_i32, %c0_i32_0 : i32, i32
  }
  func.func @transform_7(%arg0: i32) -> (i32, i32) {
    %c0_i32 = arith.constant 0 : i32
    %c0_i32_0 = arith.constant 0 : i32
    return %arg0, %c0_i32 : i32, i32
  }
}

</mosaic_0001>

<bundles_post_ra>
// kernel: tpu_custom_call.1
= control target key start
LH: loop header
LB: loop body
LE: loop exit
PB: predicated region body
PF: predicated region fallthrough
CT: control target
= control target key end

     0   :  { %s393_s0 = inlined_call_operand.hbm [shape: f32[8,32], index: 0, kind: input, shape index: {}]   ;;  %s394_s1 = inlined_call_operand.hbm [shape: u32[8,32], index: 1, kind: input, shape index: {}]   ;;  %s395_s2 = inlined_call_operand.vmem [shape: u32[8,32], index: 2, kind: input, shape index: {}]   ;;  %s396_s3 = inlined_call_operand.hbm [shape: f32[32,32], index: 3, kind: input, shape index: {}]   ;;  %s397_s4 = inlined_call_operand.vmem [shape: f32[1,32], index: 4, kind: input, shape index: {}]   ;;  %s398_s5 = inlined_call_operand.vmem [shape: f32[1,32], index: 5, kind: input, shape index: {}]   ;;  %s399_s6 = inlined_call_operand.<no memory space> [shape: f32[1,1], index: 6, kind: input, shape index: {}]   ;;  %s400_s7 = inlined_call_operand.vmem [shape: f32[8,1], index: 7, kind: output, shape index: {}]  }
   0x1   :  { %v12_v0 = vstv %s399_s6 }
   0x2   :  { %13 = vst [vmem:[#allocation2] sm:$0x1] %v12_v0 }
   0x3   :  { %14 = vsyncpa [#allocation4], 0 }
   0x4   :  { %15 = vsyncpa [#allocation6], 0  ;;  %s294_s26 = smov [#allocation5]   ;;  %s295_s28 = smov [#allocation3]  }
   0x5   :  { %s32_s27 = sshll.u32 %s294_s26, 4  ;;  %s22_s29 = sshll.u32 %s295_s28, 4  ;;  %s33_s27 = int_to_ptr.vmem [resolvable:$true] %s32_s27  ;;  %s23_s29 = int_to_ptr.vmem [resolvable:$true] %s22_s29 }
   0x6   :  { %s224_s9 = scalar_lea.hbm %s394_s1, 128 }
   0x7   :  { %p225_p0 = scmp.ne.s32.totalorder %s394_s1, %s224_s9  ;;  %p228_p1 = scmp.lt.u32.totalorder %s224_s9, %s394_s1 }
   0x9   :  { %p230_p2 = pnand %p228_p1, %p225_p0 }
   0xb   :  { %233 = shalt.err (!%p230_p2)
}
   0xc   :  { %s234_s6 = scalar_lea.vmem %s33_s27, 128  ;;  %p239_p4 = scmp.lt.s32.totalorder %s33_s27, %s33_s27 }
   0xd   :  { %p235_p3 = scmp.ne.s32.totalorder %s33_s27, %s234_s6  ;;  %p240_p5 = scmp.lt.s32.totalorder %s234_s6, %s234_s6 }
   0xf   :  { %p241_p6 = por %p240_p5, %p239_p4 }
  0x11   :  { %p242_p7 = pnand %p241_p6, %p235_p3 }
  0x13   :  { %245 = shalt.err (!%p242_p7)
}
  0x14   :  { %35 = dma.hbm_to_vmem [thread:$0]  %s394_s1, 128, %s33_s27, [#allocation6]  }
  0x15   :  { %s246_s18 = scalar_lea.hbm %s393_s0, 128 }
  0x16   :  { %p247_p8 = scmp.ne.s32.totalorder %s393_s0, %s246_s18  ;;  %p250_p9 = scmp.lt.u32.totalorder %s246_s18, %s393_s0 }
  0x18   :  { %p252_p10 = pnand %p250_p9, %p247_p8 }
  0x1a   :  { %255 = shalt.err (!%p252_p10)
}
  0x1b   :  { %s256_s23 = scalar_lea.vmem %s23_s29, 128  ;;  %p261_p12 = scmp.lt.s32.totalorder %s23_s29, %s23_s29 }
  0x1c   :  { %p257_p11 = scmp.ne.s32.totalorder %s23_s29, %s256_s23  ;;  %p262_p13 = scmp.lt.s32.totalorder %s256_s23, %s256_s23 }
  0x1e   :  { %p263_p0 = por %p262_p13, %p261_p12 }
  0x20   :  { %p264_p1 = pnand %p263_p0, %p257_p11 }
  0x22   :  { %267 = shalt.err (!%p264_p1)
}
  0x23   :  { %25 = dma.hbm_to_vmem [thread:$0]  %s393_s0, 128, %s23_s29, [#allocation4]  }
  0x24   :  { %s296_s25 = smov [#allocation7]   ;;  %s268_s30 = scalar_lea.hbm %s396_s3, 512 }
  0x25   :  { %s43_s26 = sshll.u32 %s296_s25, 4  ;;  %p269_p2 = scmp.ne.s32.totalorder %s396_s3, %s268_s30  ;;  %s44_s26 = int_to_ptr.vmem [resolvable:$true] %s43_s26 }
  0x26   :  { %p272_p3 = scmp.lt.u32.totalorder %s268_s30, %s396_s3 }
  0x28   :  { %p274_p4 = pnand %p272_p3, %p269_p2 }
  0x2a   :  { %277 = shalt.err (!%p274_p4)
}
  0x2b   :  { %s278_s12 = scalar_lea.vmem %s44_s26, 512  ;;  %p283_p6 = scmp.lt.s32.totalorder %s44_s26, %s44_s26 }
  0x2c   :  { %p279_p5 = scmp.ne.s32.totalorder %s44_s26, %s278_s12  ;;  %p284_p7 = scmp.lt.s32.totalorder %s278_s12, %s278_s12 }
  0x2e   :  { %p285_p8 = por %p284_p7, %p283_p6 }
  0x30   :  { %p286_p9 = pnand %p285_p8, %p279_p5 }
  0x32   :  { %289 = shalt.err (!%p286_p9)
}
  0x33   :  { %s297_s0 = smov 128   ;;  %s298_s29 = smov 8  }
  0x34   :  { %49 = dma.hbm_to_vmem [thread:$0]  %s396_s3, 512, %s44_s26, [#allocation6], %s297_s0, %s297_s0, %s298_s29  }
  0x35   :  { %290 = dma.done.wait [#allocation4], 128  }
  0x36   :  { %291 = vsyncadd [#allocation4], 4294967168 }
  0x37   :  { %292 = dma.done.wait [#allocation6], 640  }
  0x38   :  { %293 = vsyncadd [#allocation6], 4294966656  ;;  %v299_v1 = vmov 0.0|0.0   ;;  %vm300_vm0 = vmmov 0   ;;  %v301_v2 = vmov 0.0   ;;  %v69_v3 = vld [vmem:[#allocation7] sm:$0xff] }
  0x39   :  { %210 = vmatprep.subr.bf16.mxu0 %v299_v1  ;;  %207 = vmatprep.mubr.msk.f32.mxu0 %vm300_vm0, %v301_v2  ;;  %v70_v4 = vld [vmem:[#allocation7 + $0x8] sm:$0xff]  ;;  %v71_v5 = vld [vmem:[#allocation7 + $0x10] sm:$0xff]  ;;  %v72_v7 = vld [vmem:[#allocation7 + $0x18] sm:$0xff]  ;;  %vm73_vm2 = vcmask 261120   ;;  %vm182_vm5 = vcmask 7168  }
  0x3a   :  { %v211_v6 = vpack.c.bf16 %v70_v4, %v69_v3  ;;  %v66_v8 = vld [vmem:[#allocation5] sm:$0xff]  ;;  %v214_v9 = vpack.c.bf16 %v72_v7, %v71_v5  ;;  %v65_v10 = vld [vmem:[#allocation3] sm:$0xff]  ;;  %v191_v13 = vld [vmem:[%s397_s4] ss:$0 sm:$0xff] }
  0x3b   :  { %vm67_vm1 = vcmp.lt.u32.totalorder %v66_v8, 2147483648  ;;  %v159_v16 = vld [vmem:[%s395_s2] sm:$0xff] }
  0x3c   :  { %212 = vmatpush3.bf16.msra.mxu0 %v211_v6  ;;  %v68_v11 = vsel %vm67_vm1, %v65_v10, 0.0  ;;  %vm160_vm4 = vcmp.lt.u32.totalorder %v159_v16, 2147483648  ;;  %v192_v19 = vld [vmem:[%s398_s5] ss:$0 sm:$0xff] }
  0x3d   :  { %213 = vmatprep.subr.bf16.mxu0 %v299_v1  ;;  %v193_v25 = vld [vmem:[#allocation2] ss:$0 sm:$0xff] }
  0x40   :  { %215 = vmatpush3.bf16.msra.mxu0 %v214_v9 }
  0x43   :  { %208 = vmatmul.mubr.msk.f32.vlgmr.msra.gmra.mrb[0].mxu0 %vm73_vm2, %v68_v11 }
 0x116   :  { %v143_v12 = vpop.f32.mrb[0].mxu0 }
 0x117   :  { %v147_v14 = vmul.f32 2.0, %v143_v12  ;;  %v209_v15 = vpop.f32.mrb[1].mxu0 }
 0x119   :  { %v155_v17 = vadd.f32 %v191_v13, %v147_v14 }
 0x11b   :  { %v157_v18 = vmul.f32 0.01, %v155_v17  ;;  %vm156_vm3 = vcmp.ge.f32.partialorder %v155_v17, 0.0 }
 0x11d   :  { %v158_v20 = vsel %vm156_vm3, %v155_v17, %v157_v18 }
 0x11e   :  { %v161_v21 = vsel %vm160_vm4, %v158_v20, 0.0 }
 0x11f   :  { %v169_v22 = vmul.f32 %v192_v19, %v161_v21 }
 0x121   :  { %v170_v23 = vsel %vm73_vm2, %v169_v22, 0.0 }
 0x122   :  { %171 = vadd.xlane.f32.xlu0 %v170_v23 }
 0x1af   :  { %v172_v24 = vpop.xlane.xlu0 %171 }
 0x1b0   :  { %v173_v26 = vmul.f32 2.0, %v172_v24 }
 0x1b2   :  { %v181_v27 = vadd.f32 %v193_v25, %v173_v26 }
 0x1b4   :  { %183 = vst.msk [vmem:[%s400_s7] sm:$0xff] %vm182_vm5, %v181_v27 }
 0x1b5   :  { %188 = vsyncpa [#allocation4], 1 }
 0x1b6   :  { %189 = vsyncpa [#allocation6], 1 }

</bundles_post_ra>
